<compile_context>
chip_gen: v7x
topology: tpu7x:2x2x1
jax: 0.10.0
libtpu: 0.0.40
codegen_flags: <defaults>
</compile_context>

<pallas_src>
import functools

import jax
import jax.numpy as jnp
from jax.experimental import pallas as pl
from jax.experimental.pallas import tpu as pltpu


# ---------------------------------------------------------------------------
# Kernels
# ---------------------------------------------------------------------------

def _per_pixel_loss(x_ref, y_ref, *, ignore_index, num_classes):
    """Shared compute for one block.

    x_ref: (1, C, TR, 128) logits, y_ref: (1, TR, 128) int32 labels.
    Returns:
      per_pixel: (TR, 128) f32 BCE loss summed over classes, 0 at ignored px.
      valid:     (TR, 128) bool validity mask.
    """
    x = x_ref[0].astype(jnp.float32)                       # (C, TR, 128)
    y = y_ref[0]                                           # (TR, 128)

    valid = y != ignore_index                              # (TR, 128)
    cls = jax.lax.broadcasted_iota(jnp.int32, x.shape, 0)  # class id per slab
    hit = cls == y[None, :, :]                             # one-hot target
    if ignore_index < num_classes:
        # only needed when ignore_index could collide with a real class id
        hit = jnp.logical_and(hit, valid[None, :, :])
    t = hit.astype(jnp.float32)

    # numerically-stable BCE-with-logits (PyTorch formulation):
    #   max(x, 0) - x*t + log(1 + exp(-|x|))
    loss = jnp.maximum(x, 0.0) - x * t + jnp.log1p(jnp.exp(-jnp.abs(x)))
    per_pixel = jnp.sum(loss, axis=0)                      # sum over C (slab adds)
    per_pixel = jnp.where(valid, per_pixel, 0.0)           # drop ignored pixels
    return per_pixel, valid


def _bce_partial_kernel(x_ref, y_ref, loss_ref, cnt_ref, *,
                        ignore_index, num_classes):
    """mean/sum path: one (8, 128) lane-dense partial sum + count per block."""
    per_pixel, valid = _per_pixel_loss(
        x_ref, y_ref, ignore_index=ignore_index, num_classes=num_classes)
    tr = per_pixel.shape[0]
    # (TR,128) -> (TR//8, 8, 128) splits exactly at vreg boundaries; the sum
    # over the leading dim is plain VPU slab adds (no XLU work).
    loss_ref[...] = per_pixel.reshape(tr // 8, 8, 128).sum(axis=0)[None, None]
    cnt_ref[...] = (
        valid.astype(jnp.float32).reshape(tr // 8, 8, 128).sum(axis=0)[None, None]
    )


def _bce_none_kernel(x_ref, y_ref, out_ref, *, ignore_index, num_classes):
    """'none' path: per-pixel loss (0 at ignored pixels), matches
    `loss * targets.sum(dim=1)` in the PyTorch module."""
    per_pixel, _ = _per_pixel_loss(
        x_ref, y_ref, ignore_index=ignore_index, num_classes=num_classes)
    out_ref[...] = per_pixel[None]


# ---------------------------------------------------------------------------
# Wrapper
# ---------------------------------------------------------------------------

def _pick_tiling(num_classes, hw, itemsize, target_block_bytes):
    """Choose rows-per-block so one logits block is ~target_block_bytes."""
    rows = pl.cdiv(hw, 128)                     # 128 pixels per lane-row
    rows8 = pl.cdiv(rows, 8) * 8                # sublane alignment
    tr_target = max(
        8, (target_block_bytes // (num_classes * 128 * itemsize)) // 8 * 8)
    n_tiles = max(1, pl.cdiv(rows8, tr_target))
    tile_rows = pl.cdiv(pl.cdiv(rows8, n_tiles), 8) * 8
    rows_padded = n_tiles * tile_rows
    return tile_rows, n_tiles, rows_padded


def bce_with_logits_ignore_index(inputs, targets, *, reduction="mean",
                                 ignore_index=255, target_block_bytes=2 << 20):
    """inputs: (N, C, H, W) float logits, targets: (N, H, W) int labels."""
    N, C, H, W = inputs.shape
    HW = H * W
    itemsize = jnp.dtype(inputs.dtype).itemsize
    tile_rows, n_tiles, rows_padded = _pick_tiling(
        C, HW, itemsize, target_block_bytes)
    hw_padded = rows_padded * 128

    # Free reshapes of the native NCHW layout — no transpose, no dtype change
    # (bf16 logits stay bf16 in HBM; the kernel upcasts per-block).
    x = inputs.reshape(N, C, HW)
    y = targets.reshape(N, HW).astype(jnp.int32)
    if hw_padded != HW:
        # padded pixels are labeled ignore_index so they contribute nothing
        x = jnp.pad(x, ((0, 0), (0, 0), (0, hw_padded - HW)))
        y = jnp.pad(y, ((0, 0), (0, hw_padded - HW)),
                    constant_values=ignore_index)
    x = x.reshape(N, C, rows_padded, 128)
    y = y.reshape(N, rows_padded, 128)

    grid = (N, n_tiles)
    in_specs = [
        pl.BlockSpec((1, C, tile_rows, 128), lambda n, j: (n, 0, j, 0)),
        pl.BlockSpec((1, tile_rows, 128), lambda n, j: (n, j, 0)),
    ]
    cparams = pltpu.CompilerParams(
        dimension_semantics=("parallel", "parallel"))

    if reduction in ("mean", "sum"):
        kernel = functools.partial(_bce_partial_kernel,
                                   ignore_index=ignore_index, num_classes=C)
        loss_part, cnt_part = pl.pallas_call(
            kernel,
            out_shape=(
                jax.ShapeDtypeStruct((N, n_tiles, 8, 128), jnp.float32),
                jax.ShapeDtypeStruct((N, n_tiles, 8, 128), jnp.float32),
            ),
            grid_spec=pltpu.PrefetchScalarGridSpec(
                num_scalar_prefetch=0,
                grid=grid,
                in_specs=in_specs,
                out_specs=[
                    pl.BlockSpec((1, 1, 8, 128), lambda n, j: (n, j, 0, 0)),
                    pl.BlockSpec((1, 1, 8, 128), lambda n, j: (n, j, 0, 0)),
                ],
            ),
            compiler_params=cparams,
        )(x, y)
        loss_sum = jnp.sum(loss_part)
        if reduction == "sum":
            return loss_sum
        # NOTE: matches PyTorch 'mean' — NaN if every pixel is ignore_index.
        return loss_sum / jnp.sum(cnt_part)

    # reduction='none' (and any other value, per the module's final branch):
    # per-pixel loss summed over classes, zeroed at ignored pixels.
    kernel = functools.partial(_bce_none_kernel,
                               ignore_index=ignore_index, num_classes=C)
    out = pl.pallas_call(
        kernel,
        out_shape=jax.ShapeDtypeStruct((N, rows_padded, 128), jnp.float32),
        grid_spec=pltpu.PrefetchScalarGridSpec(
            num_scalar_prefetch=0,
            grid=grid,
            in_specs=in_specs,
            out_specs=pl.BlockSpec((1, tile_rows, 128), lambda n, j: (n, j, 0)),
        ),
        compiler_params=cparams,
    )(x, y)
    return out.reshape(N, rows_padded * 128)[:, :HW].reshape(N, H, W)


# ---------------------------------------------------------------------------
# Pure-JAX reference + self-test
# ---------------------------------------------------------------------------

def _reference(inputs, targets, *, reduction="mean", ignore_index=255):
    """Pure-JAX mirror of the PyTorch forward."""
    N, C, H, W = inputs.shape
    valid = targets != ignore_index
    t = jax.nn.one_hot(jnp.where(valid, targets, C), C + 1,
                       dtype=jnp.float32)[..., :C]                # (N,H,W,C)
    x = jnp.transpose(inputs, (0, 2, 3, 1)).astype(jnp.float32)
    loss = jnp.maximum(x, 0.0) - x * t + jnp.log1p(jnp.exp(-jnp.abs(x)))
    per_pixel = loss.sum(-1)
    masked = jnp.where(valid, per_pixel, 0.0)
    if reduction == "mean":
        return jnp.sum(masked) / jnp.sum(valid)
    if reduction == "sum":
        return jnp.sum(masked)
    return masked


if __name__ == "__main__":
    key = jax.random.PRNGKey(0)
    k1, k2, k3 = jax.random.split(key, 3)

    N, C, H, W = 2, 4, 16, 16
    ignore_index = 255

    logits = jax.random.normal(k1, (N, C, H, W), dtype=jnp.float32) * 2.0
    labels = jax.random.randint(k2, (N, H, W), 0, C, dtype=jnp.int32)
    ignore_mask = jax.random.uniform(k3, (N, H, W)) < 0.2
    labels = jnp.where(ignore_mask, ignore_index, labels)

    # default 'mean' reduction (module default)
    out_mean = jax.block_until_ready(
        bce_with_logits_ignore_index(logits, labels, reduction="mean",
                                     ignore_index=ignore_index))
    ref_mean = jax.block_until_ready(
        _reference(logits, labels, reduction="mean", ignore_index=ignore_index))
    assert jnp.allclose(out_mean, ref_mean, rtol=1e-5, atol=1e-5), (out_mean, ref_mean)

    # 'sum' reduction (same kernel, different wrapper epilogue)
    out_sum = jax.block_until_ready(
        bce_with_logits_ignore_index(logits, labels, reduction="sum",
                                     ignore_index=ignore_index))
    ref_sum = jax.block_until_ready(
        _reference(logits, labels, reduction="sum", ignore_index=ignore_index))
    assert jnp.allclose(out_sum, ref_sum, rtol=1e-5, atol=1e-5), (out_sum, ref_sum)

    print("KERNEL_OK")
</pallas_src>

<mosaic_0001>
module attributes {stable_mosaic.version = 11 : i64} {
  func.func @_bce_partial_kernel(%arg0: i32, %arg1: i32, %arg2: memref<1x4x8x128xf32, #tpu.memory_space<vmem>>, %arg3: memref<1x8x128xi32, #tpu.memory_space<vmem>>, %arg4: memref<1x1x8x128xf32, #tpu.memory_space<vmem>>, %arg5: memref<1x1x8x128xf32, #tpu.memory_space<vmem>>) attributes {dimension_semantics = [#tpu.dimension_semantics<parallel>, #tpu.dimension_semantics<parallel>], iteration_bounds = array<i64: 2, 1>, scalar_prefetch = 0 : i64, scratch_operands = 0 : i64, tpu.core_type = #tpu.core_type<tc>, window_params = [{transform_indices = @transform_0, window_bounds = array<i64: 1, 4, 8, 128>}, {transform_indices = @transform_1, window_bounds = array<i64: 1, 8, 128>}, {transform_indices = @transform_2, window_bounds = array<i64: 1, 1, 8, 128>}, {transform_indices = @transform_3, window_bounds = array<i64: 1, 1, 8, 128>}]} {
    %c0 = arith.constant 0 : index
    %c0_0 = arith.constant 0 : index
    %c0_1 = arith.constant 0 : index
    %c0_2 = arith.constant 0 : index
    %0 = vector.load %arg2[%c0, %c0_0, %c0_1, %c0_2] : memref<1x4x8x128xf32, #tpu.memory_space<vmem>>, vector<1x4x8x128xf32>
    %1 = vector.shape_cast %0 : vector<1x4x8x128xf32> to vector<4x8x128xf32>
    %c0_3 = arith.constant 0 : index
    %c0_4 = arith.constant 0 : index
    %c0_5 = arith.constant 0 : index
    %2 = vector.load %arg3[%c0_3, %c0_4, %c0_5] : memref<1x8x128xi32, #tpu.memory_space<vmem>>, vector<1x8x128xi32>
    %3 = vector.shape_cast %2 : vector<1x8x128xi32> to vector<8x128xi32>
    %c255_i32 = arith.constant 255 : i32
    %4 = vector.broadcast %c255_i32 : i32 to vector<8x128xi32>
    %5 = arith.cmpi ne, %3, %4 : vector<8x128xi32>
    %6 = tpu.iota {dimensions = array<i32: 0>} : vector<4x8x128xi32>
    %7 = vector.shape_cast %3 : vector<8x128xi32> to vector<1x8x128xi32>
    %8 = vector.broadcast %7 : vector<1x8x128xi32> to vector<4x8x128xi32>
    %9 = arith.cmpi eq, %6, %8 : vector<4x8x128xi32>
    %10 = arith.extui %9 : vector<4x8x128xi1> to vector<4x8x128xi32>
    %11 = arith.sitofp %10 : vector<4x8x128xi32> to vector<4x8x128xf32>
    %cst = arith.constant 0.000000e+00 : f32
    %12 = vector.broadcast %cst : f32 to vector<4x8x128xf32>
    %13 = arith.maximumf %1, %12 : vector<4x8x128xf32>
    %14 = arith.mulf %1, %11 : vector<4x8x128xf32>
    %15 = arith.subf %13, %14 : vector<4x8x128xf32>
    %16 = math.absf %1 : vector<4x8x128xf32>
    %cst_6 = arith.constant 0.000000e+00 : f32
    %17 = vector.broadcast %cst_6 : f32 to vector<4x8x128xf32>
    %18 = arith.subf %17, %16 : vector<4x8x128xf32>
    %19 = math.exp %18 : vector<4x8x128xf32>
    %20 = math.log1p %19 : vector<4x8x128xf32>
    %21 = arith.addf %15, %20 : vector<4x8x128xf32>
    %cst_7 = arith.constant dense<0.000000e+00> : vector<8x128xf32>
    %22 = vector.multi_reduction <add>, %21, %cst_7 [0] : vector<4x8x128xf32> to vector<8x128xf32>
    %cst_8 = arith.constant 0.000000e+00 : f32
    %23 = vector.broadcast %cst_8 : f32 to vector<8x128xf32>
    %24 = arith.select %5, %22, %23 : vector<8x128xi1>, vector<8x128xf32>
    %25 = vector.shape_cast %24 : vector<8x128xf32> to vector<1x8x128xf32>
    %cst_9 = arith.constant dense<0.000000e+00> : vector<8x128xf32>
    %26 = vector.multi_reduction <add>, %25, %cst_9 [0] : vector<1x8x128xf32> to vector<8x128xf32>
    %27 = vector.shape_cast %26 : vector<8x128xf32> to vector<1x1x8x128xf32>
    %c0_10 = arith.constant 0 : index
    %c0_11 = arith.constant 0 : index
    %c0_12 = arith.constant 0 : index
    %c0_13 = arith.constant 0 : index
    %28 = vector.load %arg4[%c0_10, %c0_11, %c0_12, %c0_13] : memref<1x1x8x128xf32, #tpu.memory_space<vmem>>, vector<1x1x8x128xf32>
    tpu.vector_store %arg4[%c0_10, %c0_11, %c0_12, %c0_13], %27 {strides = array<i32>} : memref<1x1x8x128xf32, #tpu.memory_space<vmem>>, vector<1x1x8x128xf32>,
    %29 = arith.extui %5 : vector<8x128xi1> to vector<8x128xi32>
    %30 = arith.sitofp %29 : vector<8x128xi32> to vector<8x128xf32>
    %31 = vector.shape_cast %30 : vector<8x128xf32> to vector<1x8x128xf32>
    %cst_14 = arith.constant dense<0.000000e+00> : vector<8x128xf32>
    %32 = vector.multi_reduction <add>, %31, %cst_14 [0] : vector<1x8x128xf32> to vector<8x128xf32>
    %33 = vector.shape_cast %32 : vector<8x128xf32> to vector<1x1x8x128xf32>
    %c0_15 = arith.constant 0 : index
    %c0_16 = arith.constant 0 : index
    %c0_17 = arith.constant 0 : index
    %c0_18 = arith.constant 0 : index
    %34 = vector.load %arg5[%c0_15, %c0_16, %c0_17, %c0_18] : memref<1x1x8x128xf32, #tpu.memory_space<vmem>>, vector<1x1x8x128xf32>
    tpu.vector_store %arg5[%c0_15, %c0_16, %c0_17, %c0_18], %33 {strides = array<i32>} : memref<1x1x8x128xf32, #tpu.memory_space<vmem>>, vector<1x1x8x128xf32>,
    return
  }
  func.func @transform_0(%arg0: i32, %arg1: i32) -> (i32, i32, i32, i32) {
    %c0_i32 = arith.constant 0 : i32
    %c0_i32_0 = arith.constant 0 : i32
    %c0_i32_1 = arith.constant 0 : i32
    return %arg0, %c0_i32, %arg1, %c0_i32_0 : i32, i32, i32, i32
  }
  func.func @transform_1(%arg0: i32, %arg1: i32) -> (i32, i32, i32) {
    %c0_i32 = arith.constant 0 : i32
    %c0_i32_0 = arith.constant 0 : i32
    return %arg0, %arg1, %c0_i32 : i32, i32, i32
  }
  func.func @transform_2(%arg0: i32, %arg1: i32) -> (i32, i32, i32, i32) {
    %c0_i32 = arith.constant 0 : i32
    %c0_i32_0 = arith.constant 0 : i32
    %c0_i32_1 = arith.constant 0 : i32
    return %arg0, %arg1, %c0_i32, %c0_i32_0 : i32, i32, i32, i32
  }
  func.func @transform_3(%arg0: i32, %arg1: i32) -> (i32, i32, i32, i32) {
    %c0_i32 = arith.constant 0 : i32
    %c0_i32_0 = arith.constant 0 : i32
    %c0_i32_1 = arith.constant 0 : i32
    return %arg0, %arg1, %c0_i32, %c0_i32_0 : i32, i32, i32, i32
  }
}

</mosaic_0001>

<bundles_post_ra>
// kernel: tpu_custom_call.1
= control target key start
LH: loop header
LB: loop body
LE: loop exit
PB: predicated region body
PF: predicated region fallthrough
CT: control target
= control target key end

     0   :  { %9 = vsyncpa [#allocation3], 0  ;;  %s1152_s0 = inlined_call_operand.hbm [shape: f32[2,4,8,128], index: 0, kind: input, shape index: {}]   ;;  %s1153_s1 = inlined_call_operand.hbm [shape: s32[2,8,128], index: 1, kind: input, shape index: {}]   ;;  %s1154_s2 = inlined_call_operand.hbm [shape: f32[2,1,8,128], index: 2, kind: output, shape index: {0}]   ;;  %s1155_s3 = inlined_call_operand.hbm [shape: f32[2,1,8,128], index: 3, kind: output, shape index: {1}]  }
   0x1   :  { %11 = vsyncpa [#allocation3 + $0x1], 0 }
   0x2   :  { %12 = vsyncpa [#allocation6], 0 }
   0x3   :  { %14 = vsyncpa [#allocation6 + $0x1], 0 }
   0x4   :  { %15 = vsyncpa [#allocation4], 0 }
   0x5   :  { %17 = vsyncpa [#allocation4 + $0x1], 0 }
   0x6   :  { %18 = vsyncpa [#allocation9], 0 }
   0x7   :  { %20 = vsyncpa [#allocation9 + $0x1], 0  ;;  %s851_s12 = smov 0   ;;  %s853_s13 = smov 0  }
   0x8   :  { %s855_s14 = smov 0   ;;  %s857_s15 = smov 0  }
   0x9   :  { %s859_s16 = smov 0   ;;  %s861_s17 = smov 0  }
   0xa LB: > { %s527_s18 = sadd.s32 4294967295, %s822_s17   ;;  %s528_s19 = sadd.s32 4294967294, %s822_s17   ;;  %s822_s17 = sphi %s861_s17, %s26_s17   ;;  %s818_s16 = sphi %s859_s16, %s1178_s16   ;;  %s814_s15 = sphi %s857_s15, %s1177_s15   ;;  %s810_s14 = sphi %s855_s14, %s1176_s14   ;;  %s806_s13 = sphi %s853_s13, %s1175_s13   ;;  %s802_s12 = sphi %s851_s12, %s1174_s12  }
   0xb   : > { %s38_s20 = sadd.s32 1, %s818_s16  ;;  %s47_s21 = sadd.s32 1, %s810_s14 }
   0xc   : > { %p40_p0 = scmp.ge.s32.totalorder %s38_s20, 2  ;;  %p54_p1 = scmp.ne.s32.totalorder %s810_s14, %s806_s13 }
   0xd   : > { %p55_p2 = scmp.eq.s32.totalorder %s822_s17, 0  ;;  %p60_p3 = scmp.ne.s32.totalorder %s806_s13, %s802_s12 }
   0xe   : > { %s1180_s20 = smov (%p40_p0, %s38_s20), 0  ;;  %p61_p5 = scmp.eq.s32.totalorder %s527_s18, 0 }
   0xf   : > { %p892_p4 = por %p55_p2, %p54_p1  ;;  %s42_s23 = ssub.s32 %s818_s16, %s1180_s20 }
  0x10   : > { %p114_p6 = scmp.eq.s32.totalorder %s527_s18, 1  ;;  %p45_p7 = scmp.eq.s32.totalorder %s42_s23, 0 }
  0x11   : > { %p898_p8 = por %p61_p5, %p60_p3  ;;  %p120_p10 = scmp.eq.s32.totalorder %s528_s19, 1 }
  0x12   : > { %p902_p9 = por %p114_p6, %p54_p1  ;;  %p575_p13 = scmp.lt.s32.totalorder %s822_s17, 2 }
  0x13   : > { %s1159_s24 = scalar_select %p898_p8, 1, 0 }
  0x14   : > { %s1160_s25 = scalar_select %p902_p9, 1, 0 }
  0x15   : > { %s907_s26 = scalar_select %p45_p7, %s810_s14, %s47_s21  }
  0x16   : > { %p909_p11 = por %p120_p10, %p60_p3  ;;  %s916_s28 = sand.u32 1, %s810_s14  }
  0x17   : > { %s531_s29 = sshll.u32 %s916_s28, 5  ;;  %s552_s30 = sshll.u32 %s818_s16, 9 }
  0x18   : > { %s1161_s27 = scalar_select %p909_p11, 1, 0 }
  0x19   : > { %s923_s6 = scalar_lea.hbm %s1152_s0, %s552_s30  ;;  %s172_s7 = scalar_lea.vmem [#allocation2], %s531_s29 }
  0x1a   : > { %s180_s8 = sshll.u32 %s172_s7, 4  ;;  %p929_p0 = pnand %p575_p13, %p892_p4  ;;  %s925_s8 = int_to_ptr.vmem [resolvable:$true] %s180_s8 }
  0x1b   : > { %s169_s10 = scalar_lea.sflag [#allocation3], %s916_s28  ;;  %s644_s11 = scalar_lea.hbm %s923_s6, 512 }
  0x1c   : > { %p645_p2 = scmp.ne.s32.totalorder %s923_s6, %s644_s11  ;;  %p646_p3 = pneg %p929_p0 }
  0x1d   : > { %s649_s21 = scalar_lea.hbm %s1152_s0, 1024  ;;  %p650_p4 = scmp.lt.u32.totalorder %s923_s6, %s1152_s0 }
  0x1e   : > { %p647_p5 = pnand %p646_p3, %p645_p2  ;;  %p651_p7 = scmp.lt.u32.totalorder %s649_s21, %s644_s11 }
  0x1f   : > { %p653_p13 = scmp.lt.u32.totalorder %s644_s11, %s923_s6 }
  0x20   : > { %p648_p6 = pneg %p647_p5  ;;  %p652_p10 = por %p651_p7, %p650_p4 }
  0x22   : > { %p654_p12 = por %p653_p13, %p652_p10 }
  0x24   : > { %p655_p1 = pnand %p654_p12, %p648_p6 }
  0x26   : > { %658 = shalt.err (!%p655_p1)
}
  0x27   : > { %s659_s29 = scalar_lea.vmem %s925_s8, 512  ;;  %s824_s30 = smov [#allocation2]  }
  0x28   : > { %p660_p2 = scmp.ne.s32.totalorder %s925_s8, %s659_s29  ;;  %s664_s4 = sshll.u32 %s824_s30, 4  ;;  %s665_s4 = int_to_ptr.vmem [resolvable:$false] %s664_s4 }
  0x29   : > { %s666_s5 = scalar_lea.vmem %s665_s4, 1024  ;;  %p667_p9 = scmp.lt.s32.totalorder %s925_s8, %s665_s4 }
  0x2a   : > { %p662_p5 = pnand %p660_p2, %p646_p3  ;;  %p668_p4 = scmp.lt.s32.totalorder %s666_s5, %s659_s29 }
  0x2c   : > { %p663_p11 = pneg %p662_p5  ;;  %p669_p7 = por %p668_p4, %p667_p9 }
  0x2e   : > { %p670_p10 = pnand %p669_p7, %p663_p11 }
  0x30   : > { %673 = shalt.err (!%p670_p10)
}
  0x31   : > { %s825_s7 = smov 128   ;;  %s826_s11 = smov 8  }
  0x32   : > { %564 = dma.hbm_to_vmem [thread:$0]  (!%p929_p0), %s923_s6, 512, %s925_s8, %s169_s10, %s825_s7, %s825_s7, %s826_s11  }
  0x33   : > { %p207_p12 = scmp.lt.s32.totalorder %s822_s17, 3  ;;  %s534_s18 = sshll.u32 %s916_s28, 3 }
  0x34   : > { %s535_s19 = sshll.u32 %s818_s16, 7  ;;  %p1163_p9 = scmp.ge.s32.totalorder %s822_s17, 1 }
  0x35   : > { %s974_s29 = scalar_lea.hbm %s1153_s1, %s535_s19  ;;  %s194_s30 = scalar_lea.vmem [#allocation5], %s534_s18 }
  0x36   : > { %p967_p11 = pnand %p1163_p9, %p207_p12  ;;  %s202_s4 = sshll.u32 %s194_s30, 4  ;;  %s203_s4 = int_to_ptr.vmem [resolvable:$true] %s202_s4 }
  0x37   : > { %s191_s6 = scalar_lea.sflag [#allocation6], %s916_s28  ;;  %s674_s8 = scalar_lea.hbm %s974_s29, 128 }
  0x38   : > { %s1164_s21 = scalar_select %p967_p11, 1, 0 }
  0x39   : > { %p675_p1 = scmp.ne.s32.totalorder %s974_s29, %s674_s8  ;;  %s679_s7 = scalar_lea.hbm %s1153_s1, 256 }
  0x3a   : > { %p680_p2 = scmp.lt.u32.totalorder %s974_s29, %s1153_s1  ;;  %p681_p5 = scmp.lt.u32.totalorder %s679_s7, %s674_s8 }
  0x3b   : > { %p677_p6 = pnand %p675_p1, %p646_p3  ;;  %p683_p7 = scmp.lt.u32.totalorder %s674_s8, %s974_s29 }
  0x3c   : > { %p682_p4 = por %p681_p5, %p680_p2 }
  0x3d   : > { %p678_p13 = pneg %p677_p6 }
  0x3e   : > { %p684_p10 = por %p683_p7, %p682_p4 }
  0x40   : > { %p685_p12 = pnand %p684_p10, %p678_p13 }
  0x42   : > { %688 = shalt.err (!%p685_p12)
}
  0x43   : > { %s689_s28 = scalar_lea.vmem %s203_s4, 128  ;;  %s827_s18 = smov [#allocation5]  }
  0x44   : > { %p690_p9 = scmp.ne.s32.totalorder %s203_s4, %s689_s28  ;;  %s694_s22 = sshll.u32 %s827_s18, 4  ;;  %s695_s22 = int_to_ptr.vmem [resolvable:$false] %s694_s22 }
  0x45   : > { %s696_s23 = scalar_lea.vmem %s695_s22, 256  ;;  %p697_p8 = scmp.lt.s32.totalorder %s203_s4, %s695_s22 }
  0x46   : > { %p692_p1 = pnand %p690_p9, %p646_p3  ;;  %p698_p11 = scmp.lt.s32.totalorder %s696_s23, %s689_s28 }
  0x48   : > { %p693_p6 = pneg %p692_p1  ;;  %p699_p2 = por %p698_p11, %p697_p8 }
  0x4a   : > { %p700_p5 = pnand %p699_p2, %p693_p6 }
  0x4c   : > { %703 = shalt.err (!%p700_p5)
}
  0x4d   : > { %567 = dma.hbm_to_vmem [thread:$0]  (!%p929_p0), %s974_s29, 128, %s203_s4, %s191_s6  }
  0x4e   : > { %p1165_p13 = scmp.ne.s32.totalorder %s1164_s21, 0 }
  0x4f   : > { %s999_s30 = sand.u32 (!%p1165_p13), 1, %s806_s13   ;;  %p1166_p3 = scmp.ne.s32.totalorder (!%p1165_p13), %s1159_s24, 0 }
  0x50   : > { %211 = sbr.rel (%p1165_p13) target bundleno = 167 (0xa7), region = 28  ;;  %s537_s8 = sshll.u32 (!%p1165_p13), %s999_s30, 5 }
  0x51   : > { %s214_s10 = scalar_lea.sflag (!%p1165_p13), [#allocation3], %s999_s30  ;;  %s217_s5 = scalar_lea.vmem (!%p1165_p13), [#allocation2], %s537_s8 }
  0x57   : > { %785 = dma.done.wait (%p1166_p3), %s214_s10, 512  }
  0x58   : > { %787 = vsyncadd (%p1166_p3), %s214_s10, 4294966784  ;;  %s1008_s9 = sshll.u32 %s999_s30, 3  ;;  %s223_s21 = scalar_lea.sflag [#allocation6], %s999_s30 }
  0x59   : > { %s226_s29 = scalar_lea.vmem [#allocation5], %s1008_s9 }
  0x5a   : > { %789 = dma.done.wait (%p1166_p3), %s223_s21, 128  }
  0x5b   : > { %791 = vsyncadd (%p1166_p3), %s223_s21, 4294967168  ;;  %v1016_v0 = vld [vmem:[%s217_s5] sm:$0xff]  ;;  %v1018_v1 = vld [vmem:[%s217_s5 + $0x8] sm:$0xff]  ;;  %s258_s4 = scalar_lea.vmem [#allocation8], %s1008_s9  ;;  %s548_s7 = sshll.u32 %s814_s15, 7  ;;  %v828_v13 = vmov 0.0  }
  0x5c   : > { %v1020_v2 = vld [vmem:[%s217_s5 + $0x10] sm:$0xff]  ;;  %v1022_v3 = vld [vmem:[%s217_s5 + $0x18] sm:$0xff]  ;;  %s389_s6 = sshll.u32 %s258_s4, 4  ;;  %v1025_v4 = vld [vmem:[%s226_s29] sm:$0xff]  ;;  %v289_v5 = vand.u32 2147483647, %v1016_v0  ;;  %s1040_s19 = scalar_lea.hbm %s1155_s3, %s548_s7  ;;  %s1033_s6 = int_to_ptr.vmem [resolvable:$true] %s389_s6 }
  0x5d   : > { %vm264_vm0 = vcmp.ne.s32.totalorder %v1025_v4, 255  ;;  %v290_v6 = vand.u32 2147483647, %v1018_v1  ;;  %v291_v7 = vand.u32 2147483647, %v1020_v2  ;;  %s361_s28 = scalar_lea.sflag [#allocation9], %s999_s30 }
  0x5e   : > { %v292_v8 = vand.u32 2147483647, %v1022_v3  ;;  %v293_v9 = vsub.f32 0.0, %v289_v5  ;;  %v545_v14 = vsel %vm264_vm0, 1.0, %v828_v13  ;;  %s704_s18 = scalar_lea.vmem %s1033_s6, 128  ;;  %p1167_p0 = scmp.ne.s32.totalorder %s1160_s25, 0 }
  0x5f   : > { %v294_v10 = vsub.f32 0.0, %v290_v6  ;;  %v295_v11 = vsub.f32 0.0, %v291_v7  ;;  %354 = vst [vmem:[%s258_s4] sm:$0xff] %v545_v14  ;;  %p705_p8 = scmp.ne.s32.totalorder %s1033_s6, %s704_s18  ;;  %s829_s22 = smov [#allocation8]  }
  0x60   : > { %v296_v12 = vsub.f32 0.0, %v292_v8  ;;  %v297_v15 = vmul.f32 1.442695, %v293_v9  ;;  %s708_s23 = sshll.u32 %s829_s22, 4  ;;  %s709_s23 = int_to_ptr.vmem [resolvable:$false] %s708_s23 }
  0x61   : > { %v299_v16 = vmul.f32 1.442695, %v294_v10  ;;  %v301_v17 = vmul.f32 1.442695, %v295_v11  ;;  %p706_p11 = pnand %p705_p8, %p1167_p0  ;;  %s710_s8 = scalar_lea.vmem %s709_s23, 256 }
  0x62   : > { %v303_v18 = vmul.f32 1.442695, %v296_v12  ;;  %p711_p7 = scmp.lt.s32.totalorder %s1033_s6, %s709_s23  ;;  %p712_p10 = scmp.lt.s32.totalorder %s710_s8, %s704_s18 }
  0x63   : > { %p707_p4 = pneg %p706_p11 }
  0x64   : > { %p713_p12 = por %p712_p10, %p711_p7 }
  0x66   : > { %p714_p9 = pnand %p713_p12, %p707_p4 }
  0x68   : > { %717 = shalt.err (!%p714_p9)
}
  0x69   : > { %s718_s10 = scalar_lea.hbm %s1040_s19, 128  ;;  %s722_s29 = scalar_lea.hbm %s1155_s3, 256 }
  0x6a   : > { %p719_p1 = scmp.ne.s32.totalorder %s1040_s19, %s718_s10  ;;  %p723_p5 = scmp.lt.u32.totalorder %s1040_s19, %s1155_s3 }
  0x6b   : > { %p724_p13 = scmp.lt.u32.totalorder %s722_s29, %s718_s10  ;;  %p726_p8 = scmp.lt.u32.totalorder %s718_s10, %s1040_s19 }
  0x6c   : > { %p720_p6 = pnand %p719_p1, %p1167_p0 }
  0x6d   : > { %p725_p3 = por %p724_p13, %p723_p5 }
  0x6e   : > { %p721_p2 = pneg %p720_p6 }
  0x6f   : > { %p727_p11 = por %p726_p8, %p725_p3 }
  0x71   : > { %p728_p4 = pnand %p727_p11, %p721_p2 }
  0x73   : > { %731 = shalt.err (!%p728_p4)
}
  0x74   : > { %558 = dma.vmem_to_hbm [thread:$0]  (%p1167_p0), %s1033_s6, 128, %s1040_s19, %s361_s28   ;;  %628 = vpow2.f32 %v297_v15  ;;  %vm265_vm1 = vcmp.eq.s32.totalorder %v1025_v4, 0  ;;  %vm266_vm2 = vcmp.eq.s32.totalorder %v1025_v4, 1  ;;  %vm267_vm3 = vcmp.eq.s32.totalorder %v1025_v4, 2 }
  0x75   : > { %630 = vpow2.f32 %v299_v16  ;;  %vm268_vm4 = vcmp.eq.s32.totalorder %v1025_v4, 3  ;;  %v541_v29 = vsel %vm265_vm1, 1.0, %v828_v13  ;;  %v542_v31 = vsel %vm266_vm2, 1.0, %v828_v13  ;;  %s251_s6 = scalar_lea.vmem [#allocation7], %s1008_s9  ;;  %s1103_s18 = scalar_lea.hbm %s1154_s2, %s548_s7 }
  0x76   : > { %632 = vpow2.f32 %v301_v17  ;;  %v543_v32 = vsel %vm267_vm3, 1.0, %v828_v13  ;;  %v277_v33 = vmax.f32 %v1016_v0, 0.0  ;;  %v544_v36 = vsel %vm268_vm4, 1.0, %v828_v13  ;;  %s375_s11 = sshll.u32 %s251_s6, 4  ;;  %s356_s22 = scalar_lea.sflag [#allocation4], %s999_s30  ;;  %s1096_s11 = int_to_ptr.vmem [resolvable:$true] %s375_s11 }
  0x77   : > { %634 = vpow2.f32 %v303_v18  ;;  %v281_v37 = vmul.f32 %v541_v29, %v1016_v0  ;;  %v278_v40 = vmax.f32 %v1018_v1, 0.0  ;;  %v282_v41 = vmul.f32 %v542_v31, %v1018_v1  ;;  %s732_s9 = scalar_lea.vmem %s1096_s11, 128  ;;  %s830_s23 = smov [#allocation7]  }
  0x78   : > { %v279_v44 = vmax.f32 %v1020_v2, 0.0  ;;  %v283_v45 = vmul.f32 %v543_v32, %v1020_v2  ;;  %v280_v47 = vmax.f32 %v1022_v3, 0.0  ;;  %v284_v48 = vmul.f32 %v544_v36, %v1022_v3  ;;  %p733_p7 = scmp.ne.s32.totalorder %s1096_s11, %s732_s9  ;;  %s736_s15 = sshll.u32 %s830_s23, 4  ;;  %s737_s15 = int_to_ptr.vmem [resolvable:$false] %s736_s15 }
  0x79   : > { %v285_v52 = vsub.f32 %v277_v33, %v281_v37  ;;  %v286_v57 = vsub.f32 %v278_v40, %v282_v41  ;;  %s738_s8 = scalar_lea.vmem %s737_s15, 256  ;;  %p739_p9 = scmp.lt.s32.totalorder %s1096_s11, %s737_s15 }
  0x7a   : > { %v287_v62 = vsub.f32 %v279_v44, %v283_v45  ;;  %v288_v5 = vsub.f32 %v280_v47, %v284_v48  ;;  %p734_p10 = pnand %p733_p7, %p1167_p0  ;;  %p740_p1 = scmp.lt.s32.totalorder %s738_s8, %s732_s9 }
  0x7c   : > { %p735_p12 = pneg %p734_p10  ;;  %p741_p6 = por %p740_p1, %p739_p9 }
  0x7e   : > { %v629_v19 = vpop.eup %628  ;;  %p742_p2 = pnand %p741_p6, %p735_p12 }
  0x7f   : > { %v631_v20 = vpop.eup %630  ;;  %v305_v21 = vadd.f32 1.0, %v629_v19  ;;  %v308_v26 = vmul.f32 -0.5, %v629_v19  ;;  %v311_v38 = vand.u32 2147483647, %v629_v19 }
  0x80   : > { %v633_v22 = vpop.eup %632  ;;  %v314_v23 = vadd.f32 1.0, %v631_v20  ;;  %v317_v27 = vmul.f32 -0.5, %v631_v20  ;;  %v320_v42 = vand.u32 2147483647, %v631_v20 }
  0x81   : > { %v635_v24 = vpop.eup %634  ;;  %636 = vlog2.f32 %v305_v21  ;;  %v323_v25 = vadd.f32 1.0, %v633_v22  ;;  %v326_v30 = vmul.f32 -0.5, %v633_v22  ;;  %v309_v34 = vadd.f32 1.0, %v308_v26 }
  0x82   : > { %638 = vlog2.f32 %v314_v23  ;;  %v332_v28 = vadd.f32 1.0, %v635_v24  ;;  %v335_v35 = vmul.f32 -0.5, %v635_v24  ;;  %v318_v39 = vadd.f32 1.0, %v317_v27 }
  0x83   : > { %640 = vlog2.f32 %v323_v25  ;;  %v327_v43 = vadd.f32 1.0, %v326_v30  ;;  %v329_v46 = vand.u32 2147483647, %v633_v22  ;;  %v310_v49 = vmul.f32 %v629_v19, %v309_v34 }
  0x84   : > { %642 = vlog2.f32 %v332_v28  ;;  %v336_v50 = vadd.f32 1.0, %v335_v35  ;;  %vm1083_vm5 = vcmp.lt.f32.partialorder %v311_v38, 0.0004427343  ;;  %v319_v54 = vmul.f32 %v631_v20, %v318_v39 }
  0x85   : > { %v338_v55 = vand.u32 2147483647, %v635_v24  ;;  %vm1087_vm6 = vcmp.lt.f32.partialorder %v320_v42, 0.0004427343  ;;  %v328_v60 = vmul.f32 %v633_v22, %v327_v43  ;;  %vm330_vm7 = vcmp.lt.f32.partialorder %v329_v46, 0.0004427343 }
  0x86   : > { %v337_v2 = vmul.f32 %v635_v24, %v336_v50 }
  0x87   : > { %vm339_vm8 = vcmp.lt.f32.partialorder %v338_v55, 0.0004427343 }
  0x8b   : > { %v637_v51 = vpop.eup %636 }
  0x8c   : > { %v639_v56 = vpop.eup %638  ;;  %v307_v58 = vmul.f32 0.6931472, %v637_v51 }
  0x8d   : > { %v641_v61 = vpop.eup %640  ;;  %v316_v63 = vmul.f32 0.6931472, %v639_v56 }
  0x8e   : > { %v313_v0 = vsel %vm1083_vm5, %v310_v49, %v307_v58  ;;  %v325_v1 = vmul.f32 0.6931472, %v641_v61  ;;  %v643_v3 = vpop.eup %642 }
  0x8f   : > { %v322_v6 = vsel %vm1087_vm6, %v319_v54, %v316_v63  ;;  %v341_v7 = vadd.f32 %v313_v0, %v285_v52  ;;  %v334_v9 = vmul.f32 0.6931472, %v643_v3 }
  0x90   : > { %v331_v8 = vsel %vm330_vm7, %v328_v60, %v325_v1  ;;  %v342_v10 = vadd.f32 %v322_v6, %v286_v57 }
  0x91   : > { %v343_v11 = vadd.f32 %v331_v8, %v287_v62  ;;  %v340_v12 = vsel %vm339_vm8, %v337_v2, %v334_v9 }
  0x92   : > { %v345_v13 = vadd.f32 %v342_v10, %v341_v7  ;;  %v344_v14 = vadd.f32 %v340_v12, %v288_v5 }
  0x94   : > { %v346_v15 = vadd.f32 %v345_v13, %v343_v11 }
  0x96   : > { %v347_v16 = vadd.f32 %v346_v15, %v344_v14 }
  0x98   : > { %v348_v17 = vsel %vm264_vm0, %v347_v16, 0.0 }
  0x99   : > { %350 = vst [vmem:[%s251_s6] sm:$0xff] %v348_v17 }
  0x9a   : > { %745 = shalt.err (!%p742_p2)
}
  0x9b   : > { %s746_s30 = scalar_lea.hbm %s1103_s18, 128  ;;  %s750_s5 = scalar_lea.hbm %s1154_s2, 256 }
  0x9c   : > { %p747_p5 = scmp.ne.s32.totalorder %s1103_s18, %s746_s30  ;;  %p751_p8 = scmp.lt.u32.totalorder %s1103_s18, %s1154_s2 }
  0x9d   : > { %p752_p11 = scmp.lt.u32.totalorder %s750_s5, %s746_s30  ;;  %p754_p7 = scmp.lt.u32.totalorder %s746_s30, %s1103_s18 }
  0x9e   : > { %p748_p13 = pnand %p747_p5, %p1167_p0 }
  0x9f   : > { %p753_p4 = por %p752_p11, %p751_p8 }
  0xa0   : > { %p749_p3 = pneg %p748_p13 }
  0xa1   : > { %p755_p10 = por %p754_p7, %p753_p4 }
  0xa3   : > { %p756_p12 = pnand %p755_p10, %p749_p3 }
  0xa5   : > { %759 = shalt.err (!%p756_p12)
}
  0xa6   : > { %557 = dma.vmem_to_hbm [thread:$0]  (%p1167_p0), %s1096_s11, 128, %s1103_s18, %s356_s22  }
  0xa7 PF: > { %s401_s4 = sand.u32 1, %s802_s12   ;;  %p1172_p9 = scmp.ne.s32.totalorder %s1161_s27, 0 }
  0xa8   : > { %p1173_p1 = scmp.ge.s32.totalorder %s822_s17, 2  ;;  %s402_s24 = scalar_lea.sflag [#allocation4], %s401_s4 }
  0xaa   : > { %p569_p6 = pnand %p1173_p1, %p1172_p9 }
  0xac   : > { %793 = dma.done.wait (!%p569_p6), %s402_s24, 128  }
  0xad   : > { %795 = vsyncadd (!%p569_p6), %s402_s24, 4294967168  ;;  %s411_s6 = scalar_lea.sflag [#allocation9], %s401_s4 }
  0xae   : > { %797 = dma.done.wait (!%p569_p6), %s411_s6, 128  }
  0xaf   : > { %799 = vsyncadd (!%p569_p6), %s411_s6, 4294967168  ;;  %s26_s17 = sadd.s32 1, %s822_s17   ;;  %s1174_s12 = smov %s806_s13 }
  0xb0   : > { %p23_p2 = scmp.ge.s32.totalorder %s26_s17, 4   ;;  %s1175_s13 = smov %s810_s14 }
  0xb1   : > { %s1176_s14 = smov %s907_s26  ;;  %s1177_s15 = smov %s818_s16 }
  0xb2   : > { %s1178_s16 = smov %s1180_s20  ;;  %25 = sbr.rel (!%p23_p2) target bundleno = 10 (0xa), region = 103 }
  0xb9   :  { %416 = vsyncpa [#allocation3], 1 }
  0xba   :  { %418 = vsyncpa [#allocation3 + $0x1], 1 }
  0xbb   :  { %419 = vsyncpa [#allocation6], 1 }
  0xbc   :  { %421 = vsyncpa [#allocation6 + $0x1], 1 }
  0xbd   :  { %422 = vsyncpa [#allocation4], 1 }
  0xbe   :  { %424 = vsyncpa [#allocation4 + $0x1], 1 }
  0xbf   :  { %425 = vsyncpa [#allocation9], 1 }
  0xc0   :  { %427 = vsyncpa [#allocation9 + $0x1], 1 }

</bundles_post_ra>
